<compile_context>
chip_gen: v7x
topology: tpu7x:2x2x1
jax: 0.10.0
libtpu: 0.0.40
codegen_flags: <defaults>
</compile_context>

<pallas_src>
import functools

import jax
import jax.numpy as jnp
from jax.experimental import pallas as pl
from jax.experimental.pallas import tpu as pltpu

LANE = 128


def _round_up(n, m):
    return ((n + m - 1) // m) * m


def _mlp_fused_kernel(x_ref, w0_ref, w_rest_ref, b_ref, o_ref, *, n_layers, hidden_dim):
    """Fused MLP on one row-tile of the batch.

    x_ref:      (tile_b, input_dim)           f32  (cast to bf16 in-kernel)
    w0_ref:     (input_dim, hidden_dim)       bf16 (UNpadded -- dominant DMA)
    w_rest_ref: (n_layers-1, hidden_dim, 128) bf16 (output dims zero-padded to 128)
    b_ref:      (n_layers, 128)               f32  (zero-padded biases, one row/layer)
    o_ref:      (tile_b, 128)                 f32  (lane-dense output slab)
    """
    b_all = b_ref[...]                                   # tiny, stays f32
    h = x_ref[...].astype(jnp.bfloat16)                  # in-kernel cast (VPU, under DMA slack)

    # Layer 0: (tile_b, input_dim) @ (input_dim, hidden) -> (tile_b, hidden), f32 accumulate.
    acc = jnp.dot(h, w0_ref[...], preferred_element_type=jnp.float32)
    acc = acc + b_all[0:1, :hidden_dim]
    h = jnp.maximum(acc, 0.0).astype(jnp.bfloat16)       # f32 ReLU, bf16 operand for next dot

    # Layers 1..n-1: (tile_b, hidden) @ (hidden, 128) -> (tile_b, 128).
    for i in range(1, n_layers):
        w = w_rest_ref[i - 1]                            # (hidden, 128), static index -> free
        acc = jnp.dot(h, w, preferred_element_type=jnp.float32) + b_all[i:i + 1, :]
        if i != n_layers - 1:
            # Keep only the real hidden columns (padded cols are exactly zero anyway).
            h = jnp.maximum(acc[:, :hidden_dim], 0.0).astype(jnp.bfloat16)

    o_ref[...] = acc.astype(o_ref.dtype)                 # lane-dense (tile_b, 128) store


def init_mlp_params(key, input_dim, output_dim, hidden_dim, n_blocks):
    """nn.Linear-style init: uniform(-1/sqrt(fan_in), 1/sqrt(fan_in)); f32, unpadded."""
    dims = [input_dim] + [hidden_dim] * (n_blocks - 1) + [output_dim]
    params = []
    for i in range(len(dims) - 1):
        fan_in, fan_out = dims[i], dims[i + 1]
        key, kw, kb = jax.random.split(key, 3)
        bound = 1.0 / jnp.sqrt(jnp.float32(fan_in))
        w = jax.random.uniform(kw, (fan_in, fan_out), jnp.float32, -bound, bound)
        b = jax.random.uniform(kb, (fan_out,), jnp.float32, -bound, bound)
        params.append((w, b))
    return params


def pack_params(params):
    """w0 unpadded bf16; layers 1.. stacked into one (n_layers-1, hidden, 128) bf16 buffer
    (output dims zero-padded to 128); biases packed into one (n_layers, 128) f32 block."""
    n_layers = len(params)
    assert n_layers >= 2, "need at least 2 linear layers (n_blocks >= 2)"
    hidden_dim = params[0][0].shape[1]
    assert hidden_dim <= LANE and params[-1][0].shape[1] <= LANE, (
        "hidden_dim and output_dim must be <= 128 for this packing")

    w0 = params[0][0].astype(jnp.bfloat16)                         # (input_dim, hidden)
    w_rest = jnp.zeros((n_layers - 1, hidden_dim, LANE), jnp.float32)
    b_packed = jnp.zeros((n_layers, LANE), jnp.float32)
    b_packed = b_packed.at[0, :params[0][1].shape[0]].set(params[0][1])
    for i in range(1, n_layers):
        w, b = params[i]
        fan_in, fan_out = w.shape
        w_rest = w_rest.at[i - 1, :fan_in, :fan_out].set(w)
        b_packed = b_packed.at[i, :fan_out].set(b)
    return w0, w_rest.astype(jnp.bfloat16), b_packed


def _pick_tile_b(batch):
    # Multiple-of-8 sublane tiles when the batch allows it (enables double-buffered
    # pipelining and bounds VMEM); otherwise one full-batch block (block_shape equal
    # to the array dim is always legal).  256 caps the f32 accumulator at 32 vregs.
    if batch % 8 == 0:
        return min(256, batch)
    return batch


def mlp_forward(x, w0, w_rest, b_packed, *, output_dim):
    """Forward pass: flatten (view), run the fused Pallas kernel, slice real columns."""
    B = x.shape[0]
    xf = x.reshape(B, -1)                      # metadata-only view; cast happens in-kernel
    input_dim = xf.shape[1]
    n_layers = b_packed.shape[0]
    hidden_dim = w0.shape[1]
    tile_b = _pick_tile_b(B)
    grid = (pl.cdiv(B, tile_b),)

    kernel = functools.partial(_mlp_fused_kernel, n_layers=n_layers, hidden_dim=hidden_dim)
    y_pad = pl.pallas_call(
        kernel,
        out_shape=jax.ShapeDtypeStruct((B, LANE), jnp.float32),
        grid=grid,
        in_specs=[
            pl.BlockSpec((tile_b, input_dim), lambda i: (i, 0)),                  # x: row-tiled
            pl.BlockSpec((input_dim, hidden_dim), lambda i: (0, 0)),              # w0: resident
            pl.BlockSpec((n_layers - 1, hidden_dim, LANE), lambda i: (0, 0, 0)),  # w_rest: resident
            pl.BlockSpec((n_layers, LANE), lambda i: (0, 0)),                     # biases: resident
        ],
        out_specs=pl.BlockSpec((tile_b, LANE), lambda i: (i, 0)),
        compiler_params=pltpu.CompilerParams(
            dimension_semantics=("parallel",),     # v7x: split batch tiles across 2 TCs
            vmem_limit_bytes=32 * 1024 * 1024,     # cap, not a target
        ),
    )(xf, w0, w_rest, b_packed)
    return y_pad[:, :output_dim]


def mlp_reference_f32(x, params):
    """Pure-f32 JAX reference (matches the PyTorch module's math)."""
    B = x.shape[0]
    h = x.reshape(B, -1)
    n = len(params)
    for i, (w, b) in enumerate(params):
        h = h @ w + b
        if i != n - 1:
            h = jnp.maximum(h, 0.0)
    return h


def mlp_reference_bf16(x, params):
    """Reference mirroring the kernel's bf16-operand / f32-accumulate arithmetic."""
    B = x.shape[0]
    h = x.reshape(B, -1).astype(jnp.bfloat16)
    n = len(params)
    out = None
    for i, (w, b) in enumerate(params):
        acc = jnp.dot(h, w.astype(jnp.bfloat16), preferred_element_type=jnp.float32) + b
        if i != n - 1:
            h = jnp.maximum(acc, 0.0).astype(jnp.bfloat16)
        else:
            out = acc
    return out


if __name__ == "__main__":
    # Small shapes consistent with the module: NCHW input flattened per-sample.
    B, C, H, W = 2, 4, 16, 16
    input_dim = C * H * W          # 1024
    hidden_dim = 32
    output_dim = 8
    n_blocks = 3                   # Linear -> ReLU -> Linear -> ReLU -> Linear

    key = jax.random.PRNGKey(0)
    key, kx = jax.random.split(key)
    x = jax.random.normal(kx, (B, C, H, W), jnp.float32)

    params = init_mlp_params(key, input_dim, output_dim, hidden_dim, n_blocks)
    w0, w_rest, b_packed = pack_params(params)

    fwd = jax.jit(functools.partial(mlp_forward, output_dim=output_dim))
    out = fwd(x, w0, w_rest, b_packed)
    out = jax.block_until_ready(out)

    assert out.shape == (B, output_dim), out.shape

    # Tight check against a reference using the same bf16-operand arithmetic.
    ref_bf16 = mlp_reference_bf16(x, params)
    assert jnp.allclose(out, ref_bf16, atol=1e-2, rtol=1e-2), "mismatch vs bf16 reference"

    # Looser check against the pure-f32 module math (bf16 operand rounding only).
    ref_f32 = mlp_reference_f32(x, params)
    assert jnp.allclose(out, ref_f32, atol=5e-2, rtol=5e-2), "mismatch vs f32 reference"

    print("KERNEL_OK")
</pallas_src>

<mosaic_0001>
module attributes {stable_mosaic.version = 11 : i64} {
  func.func @_mlp_fused_kernel(%arg0: i32, %arg1: memref<2x1024xf32, #tpu.memory_space<vmem>>, %arg2: memref<1024x32xbf16, #tpu.memory_space<vmem>>, %arg3: memref<2x32x128xbf16, #tpu.memory_space<vmem>>, %arg4: memref<3x128xf32, #tpu.memory_space<vmem>>, %arg5: memref<2x128xf32, #tpu.memory_space<vmem>>) attributes {dimension_semantics = [#tpu.dimension_semantics<parallel>], iteration_bounds = array<i64: 1>, scalar_prefetch = 0 : i64, scratch_operands = 0 : i64, tpu.core_type = #tpu.core_type<tc>, window_params = [{transform_indices = @transform_0, window_bounds = array<i64: 2, 1024>}, {pipeline_mode = #tpu.pipeline_mode<synchronous>, transform_indices = @transform_1, window_bounds = array<i64: 1024, 32>}, {pipeline_mode = #tpu.pipeline_mode<synchronous>, transform_indices = @transform_2, window_bounds = array<i64: 2, 32, 128>}, {pipeline_mode = #tpu.pipeline_mode<synchronous>, transform_indices = @transform_3, window_bounds = array<i64: 3, 128>}, {transform_indices = @transform_4, window_bounds = array<i64: 2, 128>}]} {
    %c0 = arith.constant 0 : index
    %c0_0 = arith.constant 0 : index
    %0 = vector.load %arg4[%c0, %c0_0] : memref<3x128xf32, #tpu.memory_space<vmem>>, vector<3x128xf32>
    %c0_1 = arith.constant 0 : index
    %c0_2 = arith.constant 0 : index
    %1 = vector.load %arg1[%c0_1, %c0_2] : memref<2x1024xf32, #tpu.memory_space<vmem>>, vector<2x1024xf32>
    %2 = arith.truncf %1 : vector<2x1024xf32> to vector<2x1024xbf16>
    %c0_3 = arith.constant 0 : index
    %c0_4 = arith.constant 0 : index
    %3 = vector.load %arg2[%c0_3, %c0_4] : memref<1024x32xbf16, #tpu.memory_space<vmem>>, vector<1024x32xbf16>
    %cst = arith.constant dense<0.000000e+00> : vector<2x32xf32>
    %4 = tpu.matmul %2, %3, %cst {dimension_numbers = #tpu.dot_dimension_numbers<[1], [0], [0], [1], [0, 0, 1, 1], [], []>} : vector<2x1024xbf16>, vector<1024x32xbf16>, vector<2x32xf32> -> vector<2x32xf32>
    %5 = vector.extract_strided_slice %0 {offsets = [0, 0], sizes = [1, 32], strides = [1, 1]} : vector<3x128xf32> to vector<1x32xf32>
    %6 = vector.broadcast %5 : vector<1x32xf32> to vector<2x32xf32>
    %7 = arith.addf %4, %6 : vector<2x32xf32>
    %cst_5 = arith.constant 0.000000e+00 : f32
    %8 = vector.broadcast %cst_5 : f32 to vector<2x32xf32>
    %9 = arith.maximumf %7, %8 : vector<2x32xf32>
    %10 = arith.truncf %9 : vector<2x32xf32> to vector<2x32xbf16>
    %c0_6 = arith.constant 0 : index
    %c0_7 = arith.constant 0 : index
    %c0_8 = arith.constant 0 : index
    %11 = vector.load %arg3[%c0_6, %c0_7, %c0_8] : memref<2x32x128xbf16, #tpu.memory_space<vmem>>, vector<1x32x128xbf16>
    %12 = vector.shape_cast %11 : vector<1x32x128xbf16> to vector<32x128xbf16>
    %cst_9 = arith.constant dense<0.000000e+00> : vector<2x128xf32>
    %13 = tpu.matmul %10, %12, %cst_9 {dimension_numbers = #tpu.dot_dimension_numbers<[1], [0], [0], [1], [0, 0, 1, 1], [], []>} : vector<2x32xbf16>, vector<32x128xbf16>, vector<2x128xf32> -> vector<2x128xf32>
    %14 = vector.extract_strided_slice %0 {offsets = [1, 0], sizes = [1, 128], strides = [1, 1]} : vector<3x128xf32> to vector<1x128xf32>
    %15 = vector.broadcast %14 : vector<1x128xf32> to vector<2x128xf32>
    %16 = arith.addf %13, %15 : vector<2x128xf32>
    %17 = vector.extract_strided_slice %16 {offsets = [0, 0], sizes = [2, 32], strides = [1, 1]} : vector<2x128xf32> to vector<2x32xf32>
    %cst_10 = arith.constant 0.000000e+00 : f32
    %18 = vector.broadcast %cst_10 : f32 to vector<2x32xf32>
    %19 = arith.maximumf %17, %18 : vector<2x32xf32>
    %20 = arith.truncf %19 : vector<2x32xf32> to vector<2x32xbf16>
    %c1 = arith.constant 1 : index
    %c0_11 = arith.constant 0 : index
    %c0_12 = arith.constant 0 : index
    %21 = vector.load %arg3[%c1, %c0_11, %c0_12] : memref<2x32x128xbf16, #tpu.memory_space<vmem>>, vector<1x32x128xbf16>
    %22 = vector.shape_cast %21 : vector<1x32x128xbf16> to vector<32x128xbf16>
    %cst_13 = arith.constant dense<0.000000e+00> : vector<2x128xf32>
    %23 = tpu.matmul %20, %22, %cst_13 {dimension_numbers = #tpu.dot_dimension_numbers<[1], [0], [0], [1], [0, 0, 1, 1], [], []>} : vector<2x32xbf16>, vector<32x128xbf16>, vector<2x128xf32> -> vector<2x128xf32>
    %24 = vector.extract_strided_slice %0 {offsets = [2, 0], sizes = [1, 128], strides = [1, 1]} : vector<3x128xf32> to vector<1x128xf32>
    %25 = vector.broadcast %24 : vector<1x128xf32> to vector<2x128xf32>
    %26 = arith.addf %23, %25 : vector<2x128xf32>
    %c0_14 = arith.constant 0 : index
    %c0_15 = arith.constant 0 : index
    %27 = vector.load %arg5[%c0_14, %c0_15] : memref<2x128xf32, #tpu.memory_space<vmem>>, vector<2x128xf32>
    tpu.vector_store %arg5[%c0_14, %c0_15], %26 {strides = array<i32>} : memref<2x128xf32, #tpu.memory_space<vmem>>, vector<2x128xf32>,
    return
  }
  func.func @transform_0(%arg0: i32) -> (i32, i32) {
    %c0_i32 = arith.constant 0 : i32
    %c0_i32_0 = arith.constant 0 : i32
    return %arg0, %c0_i32 : i32, i32
  }
  func.func @transform_1(%arg0: i32) -> (i32, i32) {
    %c0_i32 = arith.constant 0 : i32
    %c0_i32_0 = arith.constant 0 : i32
    %c0_i32_1 = arith.constant 0 : i32
    return %c0_i32, %c0_i32_0 : i32, i32
  }
  func.func @transform_2(%arg0: i32) -> (i32, i32, i32) {
    %c0_i32 = arith.constant 0 : i32
    %c0_i32_0 = arith.constant 0 : i32
    %c0_i32_1 = arith.constant 0 : i32
    %c0_i32_2 = arith.constant 0 : i32
    return %c0_i32, %c0_i32_0, %c0_i32_1 : i32, i32, i32
  }
  func.func @transform_3(%arg0: i32) -> (i32, i32) {
    %c0_i32 = arith.constant 0 : i32
    %c0_i32_0 = arith.constant 0 : i32
    %c0_i32_1 = arith.constant 0 : i32
    return %c0_i32, %c0_i32_0 : i32, i32
  }
  func.func @transform_4(%arg0: i32) -> (i32, i32) {
    %c0_i32 = arith.constant 0 : i32
    %c0_i32_0 = arith.constant 0 : i32
    return %arg0, %c0_i32 : i32, i32
  }
}

</mosaic_0001>

<bundles_post_ra>
// kernel: mlp_forward.1
= control target key start
LH: loop header
LB: loop body
LE: loop exit
PB: predicated region body
PF: predicated region fallthrough
CT: control target
= control target key end

     0   :  { %v28_v28 = vlaneseq  ;;  %v1179_v36 = vmov 1983009808   ;;  %s1445_s0 = inlined_call_operand.vmem [shape: f32[2,1024], index: 0, kind: input, shape index: {}]   ;;  %s1446_s1 = inlined_call_operand.vmem [shape: bf16[1024,32], index: 1, kind: input, shape index: {}]   ;;  %s1447_s2 = inlined_call_operand.vmem [shape: bf16[2,32,128], index: 2, kind: input, shape index: {}]   ;;  %s1448_s3 = inlined_call_operand.vmem [shape: f32[3,128], index: 3, kind: input, shape index: {}]   ;;  %s1449_s4 = inlined_call_operand.hbm [shape: f32[2,128], index: 4, kind: output, shape index: {}]  }
   0x1   :  { %v1085_v0 = vld [vmem:[%s1446_s1 + $0x40] sm:$0xff]   ;;  %v1089_v4 = vld [vmem:[%s1446_s1 + $0x48] sm:$0xff]   ;;  %v1093_v8 = vld [vmem:[%s1446_s1 + $0x50] sm:$0xff]   ;;  %v26_v37 = vunpack.c.l.s4 %v1179_v36 }
   0x2   :  { %v1086_v1 = vld [vmem:[%s1446_s1 + $0xc0] sm:$0xff]   ;;  %971 = vmatprep.subr.bf16.mxu0 %v1085_v0  ;;  %v1090_v5 = vld [vmem:[%s1446_s1 + $0xc8] sm:$0xff]   ;;  %v1094_v9 = vld [vmem:[%s1446_s1 + $0xd0] sm:$0xff]   ;;  %v1304_v33 = vshrl.u32 %v28_v28, 7 }
   0x3   :  { %v1087_v2 = vld [vmem:[%s1446_s1] sm:$0xff]   ;;  %993 = vmatprep.subr.bf16.mxu1 %v1086_v1  ;;  %v1091_v6 = vld [vmem:[%s1446_s1 + $0x8] sm:$0xff]   ;;  %v1095_v10 = vld [vmem:[%s1446_s1 + $0x10] sm:$0xff]   ;;  %v27_v39 = vunpack.c.0.s8 %v26_v37 }
   0x4   :  { %v1088_v3 = vld [vmem:[%s1446_s1 + $0x80] sm:$0xff]   ;;  %972 = vmatpush3.bf16.msra.mxu0 %v1087_v2  ;;  %v1092_v7 = vld [vmem:[%s1446_s1 + $0x88] sm:$0xff]   ;;  %v1096_v11 = vld [vmem:[%s1446_s1 + $0x90] sm:$0xff]  }
   0x5   :  { %994 = vmatpush3.bf16.msra.mxu1 %v1088_v3  ;;  %973 = vmatprep.subr.bf16.mxu0 %v1089_v4  ;;  %v1097_v12 = vld [vmem:[%s1446_s1 + $0x58] sm:$0xff]   ;;  %v1101_v16 = vld [vmem:[%s1446_s1 + $0x60] sm:$0xff]   ;;  %v1105_v20 = vld [vmem:[%s1446_s1 + $0x68] sm:$0xff]   ;;  %v1316_v41 = vsub.s32 %v27_v39, %v1304_v33 }
   0x6   :  { %995 = vmatprep.subr.bf16.mxu1 %v1090_v5  ;;  %v1098_v13 = vld [vmem:[%s1446_s1 + $0xd8] sm:$0xff]   ;;  %v1102_v17 = vld [vmem:[%s1446_s1 + $0xe0] sm:$0xff]   ;;  %v1106_v21 = vld [vmem:[%s1446_s1 + $0xe8] sm:$0xff]  }
   0x7   :  { %v1099_v14 = vld [vmem:[%s1446_s1 + $0x18] sm:$0xff]   ;;  %v1103_v18 = vld [vmem:[%s1446_s1 + $0x20] sm:$0xff]   ;;  %v1107_v22 = vld [vmem:[%s1446_s1 + $0x28] sm:$0xff]  }
   0x8   :  { %974 = vmatpush3.bf16.msra.mxu0 %v1091_v6  ;;  %v1100_v15 = vld [vmem:[%s1446_s1 + $0x98] sm:$0xff]   ;;  %v1104_v19 = vld [vmem:[%s1446_s1 + $0xa0] sm:$0xff]   ;;  %v1108_v23 = vld [vmem:[%s1446_s1 + $0xa8] sm:$0xff]  }
   0x9   :  { %996 = vmatpush3.bf16.msra.mxu1 %v1092_v7  ;;  %975 = vmatprep.subr.bf16.mxu0 %v1093_v8  ;;  %v1109_v24 = vld [vmem:[%s1446_s1 + $0x70] sm:$0xff]   ;;  %v1113_v29 = vld [vmem:[%s1446_s1 + $0x78] sm:$0xff]   ;;  %v20_v34 = vld [vmem:[%s1445_s0] sm:$0xff] }
   0xa   :  { %997 = vmatprep.subr.bf16.mxu1 %v1094_v9  ;;  %v1110_v25 = vld [vmem:[%s1446_s1 + $0xf0] sm:$0xff]   ;;  %v1114_v30 = vld [vmem:[%s1446_s1 + $0xf8] sm:$0xff]   ;;  %v1118_v35 = vld [vmem:[%s1446_s1 + $0x140] sm:$0xff]   ;;  %v24_v40 = vcombine.high %v20_v34, %v20_v34  ;;  %v31_v42 = vrot.slane %v20_v34, %v1316_v41 }
   0xb   :  { %v1111_v26 = vld [vmem:[%s1446_s1 + $0x30] sm:$0xff]   ;;  %v1115_v31 = vld [vmem:[%s1446_s1 + $0x38] sm:$0xff]   ;;  %v1119_v38 = vld [vmem:[%s1446_s1 + $0x1c0] sm:$0xff]  }
   0xc   :  { %976 = vmatpush3.bf16.msra.mxu0 %v1095_v10  ;;  %v1112_v27 = vld [vmem:[%s1446_s1 + $0xb0] sm:$0xff]   ;;  %v1116_v32 = vld [vmem:[%s1446_s1 + $0xb8] sm:$0xff]   ;;  %v38_v43 = vrot.slane %v24_v40, %v1316_v41  ;;  %v39_v44 = vcombine.high %v31_v42, %v31_v42  ;;  %v1120_v46 = vld [vmem:[%s1446_s1 + $0x100] sm:$0xff]   ;;  %v66_v47 = vpack.c.bf16 %v31_v42, %v31_v42 }
   0xd   :  { %998 = vmatpush3.bf16.msra.mxu1 %v1096_v11  ;;  %977 = vmatprep.subr.bf16.mxu0 %v1097_v12  ;;  %v1121_v49 = vld [vmem:[%s1446_s1 + $0x180] sm:$0xff]   ;;  %v1122_v52 = vld [vmem:[%s1446_s1 + $0x148] sm:$0xff]   ;;  %v1126_v56 = vld [vmem:[%s1446_s1 + $0x150] sm:$0xff]  }
   0xe   :  { %999 = vmatprep.subr.bf16.mxu1 %v1098_v13  ;;  %v40_v45 = vcombine.high %v38_v43, %v38_v43  ;;  %v68_v48 = vpack.c.bf16 %v38_v43, %v38_v43  ;;  %v67_v50 = vpack.c.bf16 %v39_v44, %v39_v44  ;;  %v1123_v53 = vld [vmem:[%s1446_s1 + $0x1c8] sm:$0xff]   ;;  %v1127_v57 = vld [vmem:[%s1446_s1 + $0x1d0] sm:$0xff]   ;;  %v1130_v60 = vld [vmem:[%s1446_s1 + $0x158] sm:$0xff]  }
   0xf   :  { %v1124_v54 = vld [vmem:[%s1446_s1 + $0x108] sm:$0xff]   ;;  %v1128_v58 = vld [vmem:[%s1446_s1 + $0x110] sm:$0xff]   ;;  %v1131_v61 = vld [vmem:[%s1446_s1 + $0x1d8] sm:$0xff]  }
  0x10   :  { %978 = vmatpush3.bf16.msra.mxu0 %v1099_v14  ;;  %v69_v51 = vpack.c.bf16 %v40_v45, %v40_v45  ;;  %622 = vmatprep.mubr.bf16.mxu0 %v67_v50  ;;  %v1125_v55 = vld [vmem:[%s1446_s1 + $0x188] sm:$0xff]   ;;  %v1129_v59 = vld [vmem:[%s1446_s1 + $0x190] sm:$0xff]   ;;  %v1132_v62 = vld [vmem:[%s1446_s1 + $0x118] sm:$0xff]  }
  0x11   :  { %1000 = vmatpush3.bf16.msra.mxu1 %v1100_v15  ;;  %979 = vmatprep.subr.bf16.mxu0 %v1101_v16  ;;  %v1133_v63 = vld [vmem:[%s1446_s1 + $0x198] sm:$0xff]   ;;  %v1134_v0 = vld [vmem:[%s1446_s1 + $0x160] sm:$0xff]   ;;  %v1138_v4 = vld [vmem:[%s1446_s1 + $0x168] sm:$0xff]  }
  0x12   :  { %1001 = vmatprep.subr.bf16.mxu1 %v1102_v17  ;;  %662 = vmatprep.mubr.bf16.mxu1 %v69_v51  ;;  %v1135_v1 = vld [vmem:[%s1446_s1 + $0x1e0] sm:$0xff]   ;;  %v1139_v5 = vld [vmem:[%s1446_s1 + $0x1e8] sm:$0xff]   ;;  %v1142_v8 = vld [vmem:[%s1446_s1 + $0x170] sm:$0xff]  }
  0x13   :  { %v1136_v2 = vld [vmem:[%s1446_s1 + $0x120] sm:$0xff]   ;;  %v1140_v6 = vld [vmem:[%s1446_s1 + $0x128] sm:$0xff]   ;;  %v1143_v9 = vld [vmem:[%s1446_s1 + $0x1f0] sm:$0xff]  }
  0x14   :  { %980 = vmatpush3.bf16.msra.mxu0 %v1103_v18  ;;  %v1137_v3 = vld [vmem:[%s1446_s1 + $0x1a0] sm:$0xff]   ;;  %v1141_v7 = vld [vmem:[%s1446_s1 + $0x1a8] sm:$0xff]   ;;  %v1144_v11 = vld [vmem:[%s1446_s1 + $0x130] sm:$0xff]  }
  0x15   :  { %1002 = vmatpush3.bf16.msra.mxu1 %v1104_v19  ;;  %981 = vmatprep.subr.bf16.mxu0 %v1105_v20  ;;  %v21_v10 = vld [vmem:[%s1445_s0 + $0x8] sm:$0xff]  ;;  %v1145_v14 = vld [vmem:[%s1446_s1 + $0x1b0] sm:$0xff]  }
  0x16   :  { %1003 = vmatprep.subr.bf16.mxu1 %v1106_v21  ;;  %v48_v12 = vrot.slane %v21_v10, %v1316_v41  ;;  %v41_v13 = vcombine.high %v21_v10, %v21_v10 }
  0x18   :  { %982 = vmatpush3.bf16.msra.mxu0 %v1107_v22  ;;  %v56_v15 = vcombine.high %v48_v12, %v48_v12  ;;  %v55_v16 = vrot.slane %v41_v13, %v1316_v41 }
  0x19   :  { %1004 = vmatpush3.bf16.msra.mxu1 %v1108_v23  ;;  %983 = vmatprep.subr.bf16.mxu0 %v1109_v24 }
  0x1a   :  { %1005 = vmatprep.subr.bf16.mxu1 %v1110_v25 }
  0x1c   :  { %984 = vmatpush3.bf16.msra.mxu0 %v1111_v26 }
  0x1d   :  { %1006 = vmatpush3.bf16.msra.mxu1 %v1112_v27  ;;  %985 = vmatprep.subr.bf16.mxu0 %v1113_v29 }
  0x1e   :  { %1007 = vmatprep.subr.bf16.mxu1 %v1114_v30 }
  0x20   :  { %986 = vmatpush3.bf16.msra.mxu0 %v1115_v31 }
  0x21   :  { %1008 = vmatpush3.bf16.msra.mxu1 %v1116_v32  ;;  %1015 = vmatprep.subr.bf16.mxu0 %v1118_v35 }
  0x22   :  { %1037 = vmatprep.subr.bf16.mxu1 %v1119_v38 }
  0x23   :  { %623 = vmatmul.mubr.bf16.vlgmr.msra.gmra.mrb[0].mxu0 %v66_v47 }
  0x24   :  { %663 = vmatmul.mubr.bf16.vlgmr.msra.gmra.mrb[0].mxu1 %v68_v48  ;;  %1016 = vmatpush3.bf16.msra.mxu0 %v1120_v46 }
  0x25   :  { %1038 = vmatpush3.bf16.msra.mxu1 %v1121_v49  ;;  %1017 = vmatprep.subr.bf16.mxu0 %v1122_v52 }
  0x26   :  { %1039 = vmatprep.subr.bf16.mxu1 %v1123_v53 }
  0x28   :  { %1018 = vmatpush3.bf16.msra.mxu0 %v1124_v54 }
  0x29   :  { %1040 = vmatpush3.bf16.msra.mxu1 %v1125_v55  ;;  %1019 = vmatprep.subr.bf16.mxu0 %v1126_v56 }
  0x2a   :  { %1041 = vmatprep.subr.bf16.mxu1 %v1127_v57 }
  0x2c   :  { %1020 = vmatpush3.bf16.msra.mxu0 %v1128_v58 }
  0x2d   :  { %1042 = vmatpush3.bf16.msra.mxu1 %v1129_v59  ;;  %1021 = vmatprep.subr.bf16.mxu0 %v1130_v60 }
  0x2e   :  { %1043 = vmatprep.subr.bf16.mxu1 %v1131_v61 }
  0x30   :  { %1022 = vmatpush3.bf16.msra.mxu0 %v1132_v62 }
  0x31   :  { %1044 = vmatpush3.bf16.msra.mxu1 %v1133_v63  ;;  %1023 = vmatprep.subr.bf16.mxu0 %v1134_v0 }
  0x32   :  { %1045 = vmatprep.subr.bf16.mxu1 %v1135_v1 }
  0x34   :  { %1024 = vmatpush3.bf16.msra.mxu0 %v1136_v2 }
  0x35   :  { %1046 = vmatpush3.bf16.msra.mxu1 %v1137_v3  ;;  %1025 = vmatprep.subr.bf16.mxu0 %v1138_v4 }
  0x36   :  { %1047 = vmatprep.subr.bf16.mxu1 %v1139_v5 }
  0x38   :  { %1026 = vmatpush3.bf16.msra.mxu0 %v1140_v6 }
  0x39   :  { %1048 = vmatpush3.bf16.msra.mxu1 %v1141_v7 }
  0x3a   :  { %9 = vsyncpa [#allocation3], 0  ;;  %1027 = vmatprep.subr.bf16.mxu0 %v1142_v8  ;;  %1049 = vmatprep.subr.bf16.mxu1 %v1143_v9  ;;  %v1146_v17 = vld [vmem:[%s1446_s1 + $0x178] sm:$0xff]   ;;  %v71_v19 = vpack.c.bf16 %v56_v15, %v56_v15  ;;  %v57_v20 = vcombine.high %v55_v16, %v55_v16  ;;  %v70_v24 = vpack.c.bf16 %v48_v12, %v48_v12  ;;  %v1151_v26 = vld [vmem:[%s1447_s2] sm:$0xff]   ;;  %v1180_v27 = vmov 0.0   ;;  %s1182_s24 = smov [#allocation2]  }
  0x3b   :  { %v1147_v18 = vld [vmem:[%s1446_s1 + $0x1f8] sm:$0xff]   ;;  %v72_v25 = vpack.c.bf16 %v55_v16, %v55_v16  ;;  %v1152_v28 = vld [vmem:[%s1447_s2 + $0x8] sm:$0xff]   ;;  %vm1181_vm0 = vmmov 0   ;;  %v1153_v29 = vld [vmem:[%s1447_s2 + $0x10] sm:$0xff]   ;;  %v204_v30 = vsub.s32 0, %v1304_v33  ;;  %vm772_vm1 = vcmask 261120  }
  0x3c   :  { %1028 = vmatpush3.bf16.msra.mxu0 %v1144_v11  ;;  %v1148_v21 = vld [vmem:[%s1446_s1 + $0x138] sm:$0xff]   ;;  %v73_v23 = vpack.c.bf16 %v57_v20, %v57_v20  ;;  %702 = vmatprep.mubr.bf16.mxu0 %v71_v19  ;;  %v19_v31 = vld [vmem:[%s1448_s3] sm:$0x7]  ;;  %v758_v61 = vsub.s32 1, %v1304_v33  ;;  %v825_v6 = vsub.s32 2, %v1304_v33  ;;  %s889_s25 = sshll.u32 %s1182_s24, 4  ;;  %s890_s25 = int_to_ptr.vmem [resolvable:$true] %s889_s25 }
  0x3d   :  { %1050 = vmatpush3.bf16.msra.mxu1 %v1145_v14  ;;  %v1149_v22 = vld [vmem:[%s1446_s1 + $0x1b8] sm:$0xff]   ;;  %1029 = vmatprep.subr.bf16.mxu0 %v1146_v17  ;;  %v205_v35 = vrot.slane %v19_v31, %v204_v30  ;;  %p1160_p1 = scmp.lt.s32.totalorder %s890_s25, %s890_s25 }
  0x3e   :  { %1051 = vmatprep.subr.bf16.mxu1 %v1147_v18  ;;  %742 = vmatprep.mubr.bf16.mxu1 %v73_v23  ;;  %v1154_v60 = vld [vmem:[%s1447_s2 + $0x18] sm:$0xff]   ;;  %v759_v62 = vrot.slane %v19_v31, %v758_v61  ;;  %v826_v7 = vrot.slane %v19_v31, %v825_v6  ;;  %s1155_s2 = scalar_lea.vmem %s890_s25, 32 }
  0x3f   :  { %p1156_p0 = scmp.ne.s32.totalorder %s890_s25, %s1155_s2  ;;  %p1161_p2 = scmp.lt.s32.totalorder %s1155_s2, %s1155_s2 }
  0x40   :  { %1030 = vmatpush3.bf16.msra.mxu0 %v1148_v21 }
  0x41   :  { %1052 = vmatpush3.bf16.msra.mxu1 %v1149_v22  ;;  %1065 = vmatprep.subr.bf16.mxu0 %v1180_v27  ;;  %p1162_p3 = por %p1161_p2, %p1160_p1 }
  0x42   :  { %1073 = vmatprep.subr.bf16.mxu1 %v1180_v27 }
  0x43   :  { %703 = vmatmul.mubr.bf16.vlgmr.msra.gmra.mrb[4].mxu0 %v70_v24  ;;  %p1163_p4 = pnand %p1162_p3, %p1156_p0 }
  0x44   :  { %743 = vmatmul.mubr.bf16.vlgmr.msra.gmra.mrb[4].mxu1 %v72_v25  ;;  %1066 = vmatpush3.bf16.msra.mxu0 %v1151_v26 }
  0x45   :  { %1067 = vmatprep.subr.bf16.mxu0 %v1180_v27  ;;  %1069 = vmatprep.mubr.msk.bf16.mxu0 %vm1181_vm0, %v1180_v27 }
  0x46   :  { %1077 = vmatprep.mubr.msk.bf16.mxu1 %vm1181_vm0, %v1180_v27  ;;  %1074 = vmatpush3.bf16.msra.mxu1 %v1153_v29 }
  0x47   :  { %1075 = vmatprep.subr.bf16.mxu1 %v1180_v27 }
  0x48   :  { %1068 = vmatpush3.bf16.msra.mxu0 %v1152_v28 }
  0x4a   :  { %1076 = vmatpush3.bf16.msra.mxu1 %v1154_v60 }
  0xf6   :  { %v987_v32 = vpop.f32.mrb[0].mxu0 }
  0xf7   :  { %v1009_v34 = vpop.f32.mrb[0].mxu1  ;;  %v988_v36 = vpop.f32.mrb[1].mxu0 }
  0xf8   :  { %v1010_v37 = vpop.f32.mrb[1].mxu1  ;;  %v989_v38 = vadd.f32 %v988_v36, %v987_v32  ;;  %v990_v40 = vpop.f32.mrb[2].mxu0 }
  0xf9   :  { %v1011_v39 = vadd.f32 %v1010_v37, %v1009_v34  ;;  %v1012_v41 = vpop.f32.mrb[2].mxu1  ;;  %v991_v42 = vpop.f32.mrb[3].mxu0 }
  0xfa   :  { %v1013_v43 = vpop.f32.mrb[3].mxu1  ;;  %v625_v44 = vadd.f32 %v989_v38, %v205_v35 }
  0xfc   :  { %v665_v45 = vadd.f32 %v1011_v39, %v625_v44 }
 0x116   :  { %v1031_v46 = vpop.f32.mrb[4].mxu0 }
 0x117   :  { %v1053_v47 = vpop.f32.mrb[4].mxu1  ;;  %v1032_v48 = vpop.f32.mrb[5].mxu0 }
 0x118   :  { %v1054_v49 = vpop.f32.mrb[5].mxu1  ;;  %v1033_v50 = vadd.f32 %v1032_v48, %v1031_v46  ;;  %v1034_v52 = vpop.f32.mrb[6].mxu0 }
 0x119   :  { %v1055_v51 = vadd.f32 %v1054_v49, %v1053_v47  ;;  %v1056_v53 = vpop.f32.mrb[6].mxu1  ;;  %v1035_v54 = vpop.f32.mrb[7].mxu0 }
 0x11a   :  { %v1057_v55 = vpop.f32.mrb[7].mxu1  ;;  %v705_v56 = vadd.f32 %v1033_v50, %v665_v45 }
 0x11c   :  { %v745_v57 = vadd.f32 %v1055_v51, %v705_v56 }
 0x11e   :  { %v750_v58 = vmax.f32 %v745_v57, 0.0 }
 0x120   :  { %v751_v59 = vpack.c.bf16 %v750_v58, %v750_v58 }
 0x122   :  { %1070 = vmatmul.mubr.msk.bf16.vlgmr.msra.gmra.mrb[8].mxu0 %vm772_vm1, %v751_v59 }
 0x1f5   :  { %v810_v63 = vpop.f32.mrb[8].mxu0 }
 0x1f6   :  { %v811_v0 = vadd.f32 %v810_v63, %v759_v62  ;;  %v1071_v1 = vpop.f32.mrb[9].mxu0 }
 0x1f7   :  { %v813_v2 = vpop.f32.mrb[10].mxu0 }
 0x1f8   :  { %v816_v3 = vmax.f32 %v811_v0, 0.0  ;;  %v1072_v4 = vpop.f32.mrb[11].mxu0 }
 0x1fa   :  { %v817_v5 = vpack.c.bf16 %v816_v3, %v816_v3 }
 0x1fc   :  { %1078 = vmatmul.mubr.msk.bf16.vlgmr.msra.gmra.mrb[8].mxu1 %vm772_vm1, %v817_v5 }
 0x2cf   :  { %v876_v8 = vpop.f32.mrb[8].mxu1 }
 0x2d0   :  { %v877_v9 = vadd.f32 %v876_v8, %v826_v7  ;;  %v1079_v10 = vpop.f32.mrb[9].mxu1 }
 0x2d1   :  { %v879_v11 = vpop.f32.mrb[10].mxu1 }
 0x2d2   :  { %882 = vst [vmem:[#allocation2] sm:$0x3] %v877_v9  ;;  %v1080_v12 = vpop.f32.mrb[11].mxu1 }
 0x2d3   :  { %1166 = shalt.err (!%p1163_p4)
}
 0x2d4   :  { %s1167_s28 = scalar_lea.hbm %s1449_s4, 32 }
 0x2d5   :  { %p1168_p5 = scmp.ne.s32.totalorder %s1449_s4, %s1167_s28  ;;  %p1171_p6 = scmp.lt.u32.totalorder %s1167_s28, %s1449_s4 }
 0x2d7   :  { %p1173_p7 = pnand %p1171_p6, %p1168_p5 }
 0x2d9   :  { %1176 = shalt.err (!%p1173_p7)
}
 0x2da   :  { %892 = dma.vmem_to_hbm [thread:$0]  %s890_s25, 32, %s1449_s4, [#allocation3]  }
 0x2db   :  { %1177 = dma.done.wait [#allocation3], 32  }
 0x2dc   :  { %1178 = vsyncadd [#allocation3], 4294967264 }
 0x2dd   :  { %896 = vsyncpa [#allocation3], 1 }

</bundles_post_ra>
